<compile_context>
chip_gen: v5e
topology: v5e:2x2
jax: 0.10.0
libtpu: 0.0.40
codegen_flags: <defaults>
</compile_context>

<pallas_src>
import functools

import jax
import jax.numpy as jnp
from jax import lax
from jax.experimental import pallas as pl
from jax.experimental.pallas import tpu as pltpu

_LANE_CHOICES = (512, 256, 128)   # preferred lane widths (multiples of 128)


def _chip_defaults():
    """(block_rows, num_partials) tuned per TPU generation; conservative fallback."""
    kind = ""
    try:
        kind = jax.devices()[0].device_kind.lower()
    except Exception:
        pass
    if "v7" in kind:
        return 2048, 2      # 2 TensorCores/chip, 3.2 TB/s HBM, 64 MiB VMEM
    if "v6" in kind:
        return 1024, 1      # 1 TC; ~85% -> ~86%+ of HBM roofline vs 512 rows
    return 512, 1           # v5e / unknown: stays well under 16 MiB scoped VMEM


def _round_up(v, m):
    return -(-v // m) * m


def _sse_kernel(x_ref, t_ref, o_ref, acc_ref, *,
                blocks_per_p, total_blocks, block_rows, lanes,
                grouped, tail_rows, has_phantom):
    """Accumulates sum((x - t)^2) for one partial; one lane-dense store at end."""
    p = pl.program_id(0)   # partial id ("parallel")
    j = pl.program_id(1)   # streaming step within the partial ("arbitrary")

    @pl.when(j == 0)
    def _():
        acc_ref[...] = jnp.zeros_like(acc_ref)

    def accumulate(masked):
        d = x_ref[...].astype(jnp.float32) - t_ref[...].astype(jnp.float32)
        sq = d * d
        if masked:
            # Select-form mask: boundary-overhang rows may hold garbage
            # (NaN/Inf); jnp.where discards them.  Do NOT use a multiplicative
            # mask here.
            row = lax.broadcasted_iota(jnp.int32, (block_rows, lanes), 0)
            sq = jnp.where(row < tail_rows, sq, 0.0)
        if grouped:
            # Fold the block into the small (8, lanes) accumulator: pure VALU
            # adds across 8-row groups, no cross-lane movement, tiny acc traffic.
            contrib = sq.reshape(block_rows // 8, 8, lanes).sum(axis=0)
        else:
            contrib = sq                      # small full-dim block
        acc_ref[...] += contrib

    if tail_rows == block_rows and not has_phantom:
        accumulate(masked=False)              # mask-free steady state
    else:
        b = p * blocks_per_p + j              # logical (un-clamped) block index
        last = total_blocks - 1

        @pl.when(b < last)
        def _():
            accumulate(masked=False)          # full interior block

        @pl.when(b == last)
        def _():
            accumulate(masked=(tail_rows != block_rows))
        # b > last: clamped duplicate (phantom) step -> contributes nothing.

    @pl.when(j == blocks_per_p - 1)
    def _():
        total = jnp.sum(acc_ref[...])          # single cross-lane reduce/partial
        o_ref[...] = jnp.broadcast_to(total, (1, 128))   # lane-dense store


def _plan(rows, block_rows_cfg, num_partials_cfg):
    """Exact-as-possible partition of `rows` into (num_partials, blocks_per_p)."""
    if rows <= block_rows_cfg:
        # Single full-extent block; no split, no masking, no phantom.
        return dict(block_rows=rows, blocks_per_p=1, total_blocks=1,
                    num_partials=1, has_phantom=False)

    block_rows = block_rows_cfg               # multiple of 8 by construction
    total_blocks = -(-rows // block_rows)
    num_partials = min(num_partials_cfg, total_blocks)   # never split tiny work
    has_phantom = False

    if num_partials > 1 and total_blocks % num_partials != 0:
        # Re-fit the block size so the block count divides evenly across the
        # partials (eliminates the wasted duplicate-block DMA entirely).
        bpp = -(-total_blocks // num_partials)
        n_blk = num_partials * bpp
        cand = _round_up(-(-rows // n_blk), 8)
        if (n_blk - 1) * cand < rows:         # last block must stay non-empty
            block_rows = cand
            total_blocks = n_blk
        else:
            has_phantom = True                # one clamped duplicate, compute skipped

    blocks_per_p = -(-total_blocks // num_partials)
    return dict(block_rows=block_rows, blocks_per_p=blocks_per_p,
                total_blocks=total_blocks, num_partials=num_partials,
                has_phantom=has_phantom)


def content_loss_forward(x, target, *, block_rows=None, num_partials=None):
    """Returns (input_passthrough, mse_loss) matching ContentLoss.forward."""
    assert x.shape == target.shape, "input / target shape mismatch"
    n = x.size
    itemsize = jnp.dtype(x.dtype).itemsize

    cfg_rows, cfg_partials = _chip_defaults()
    if block_rows is None:
        block_rows = cfg_rows
    if num_partials is None:
        num_partials = cfg_partials

    xf = x.reshape(-1)
    tf = target.reshape(-1)

    lanes = next((l for l in _LANE_CHOICES if n % l == 0), _LANE_CHOICES[-1])
    n_main = (n // lanes) * lanes             # kernel-processed prefix
    # <=127-element ragged tail handled with plain jnp (no full-array pad copy).
    tail_sse = jnp.float32(0.0)
    if n_main != n:
        dt = xf[n_main:].astype(jnp.float32) - tf[n_main:].astype(jnp.float32)
        tail_sse = jnp.sum(dt * dt)

    if n_main == 0:
        # Degenerate tiny input: nothing for the kernel to do.
        return x, tail_sse / jnp.float32(n)

    rows = n_main // lanes
    xm = xf[:n_main].reshape(rows, lanes)     # lane-dense slab (free reshape)
    tm = tf[:n_main].reshape(rows, lanes)

    plan = _plan(rows, block_rows, num_partials)
    br = plan["block_rows"]
    bpp = plan["blocks_per_p"]
    total_blocks = plan["total_blocks"]
    P = plan["num_partials"]
    has_phantom = plan["has_phantom"]

    tail_rows = rows - (total_blocks - 1) * br      # valid rows in final block
    grouped = (br % 8 == 0)
    acc_rows = 8 if grouped else br                 # small accumulator scratch

    kernel = functools.partial(
        _sse_kernel,
        blocks_per_p=bpp, total_blocks=total_blocks, block_rows=br,
        lanes=lanes, grouped=grouped, tail_rows=tail_rows,
        has_phantom=has_phantom)

    if has_phantom:
        def in_map(p, j):
            # Clamp so the single phantom step re-reads a valid block; its
            # compute is skipped inside the kernel.
            return (jnp.minimum(p * bpp + j, total_blocks - 1), 0)
    else:
        def in_map(p, j):
            return (p * bpp + j, 0)

    block_bytes = br * lanes * itemsize
    vmem_limit = 48 * 1024 * 1024 if block_bytes >= (4 << 20) else 32 * 1024 * 1024

    partials = pl.pallas_call(
        kernel,
        out_shape=jax.ShapeDtypeStruct((1, P * 128), jnp.float32),
        grid_spec=pltpu.PrefetchScalarGridSpec(
            num_scalar_prefetch=0,
            grid=(P, bpp),
            in_specs=[
                pl.BlockSpec((br, lanes), in_map),
                pl.BlockSpec((br, lanes), in_map),
            ],
            out_specs=pl.BlockSpec((1, 128), lambda p, j: (0, p)),
            scratch_shapes=[pltpu.VMEM((acc_rows, lanes), jnp.float32)],
        ),
        compiler_params=pltpu.CompilerParams(
            dimension_semantics=("parallel", "arbitrary"),
            vmem_limit_bytes=vmem_limit,
        ),
        cost_estimate=pl.CostEstimate(
            flops=3 * n_main,                               # sub, mul, add / element
            transcendentals=0,
            bytes_accessed=2 * n_main * itemsize + P * 128 * 4,
        ),
    )(xm, tm)

    # Each 128-lane chunk holds that partial's sum broadcast across lanes.
    sse = jnp.sum(partials.reshape(P, 128)[:, 0]) + tail_sse
    loss = sse / jnp.float32(n)

    # TODO(synk): stateful `self.loss` attribute has no Pallas equivalent; the
    # loss is returned as a second output alongside the pass-through input.
    return x, loss


if __name__ == "__main__":
    root = jax.random.PRNGKey(0)

    def run_case(k, shape, **kw):
        k1, k2 = jax.random.split(k)
        x = jax.random.normal(k1, shape, dtype=jnp.float32)
        t = jax.random.normal(k2, shape, dtype=jnp.float32)   # target.detach()
        out, loss = content_loss_forward(x, t, **kw)
        out = jax.block_until_ready(out)
        loss = jax.block_until_ready(loss)
        ref = jnp.mean((x - t) ** 2)                           # F.mse_loss default = mean
        assert jnp.allclose(loss, ref, rtol=1e-5, atol=1e-6), (shape, kw, loss, ref)
        assert jnp.array_equal(out, x), shape                  # pass-through semantics

    keys = jax.random.split(root, 3)
    # Small NCHW feature maps, consistent with a conv feature layer.
    run_case(keys[0], (2, 4, 16, 16))
    # Exercise multi-block streaming, two partials, masked tail block and the
    # (rare) clamped phantom step via small override tiles.
    run_case(keys[1], (1, 8, 40, 64), block_rows=16, num_partials=2)
    # Exercise the ragged lane fallback (n % 128 != 0): kernel prefix + jnp tail.
    run_case(keys[2], (1, 3, 17, 19))

    print("KERNEL_OK")
</pallas_src>

<mosaic_0001>
module attributes {stable_mosaic.version = 11 : i64} {
  func.func @_sse_kernel(%arg0: i32, %arg1: i32, %arg2: memref<4x512xf32, #tpu.memory_space<vmem>>, %arg3: memref<4x512xf32, #tpu.memory_space<vmem>>, %arg4: memref<1x128xf32, #tpu.memory_space<vmem>>, %arg5: memref<4x512xf32, #tpu.memory_space<vmem>>) attributes {dimension_semantics = [#tpu.dimension_semantics<parallel>, #tpu.dimension_semantics<arbitrary>], iteration_bounds = array<i64: 1, 1>, scalar_prefetch = 0 : i64, scratch_operands = 1 : i64, tpu.core_type = #tpu.core_type<tc>, window_params = [{transform_indices = @transform_0, window_bounds = array<i64: 4, 512>}, {transform_indices = @transform_1, window_bounds = array<i64: 4, 512>}, {transform_indices = @transform_2, window_bounds = array<i64: 1, 128>}]} {
    %c0_i32 = arith.constant 0 : i32
    %0 = arith.cmpi eq, %arg1, %c0_i32 : i32
    %1 = arith.extui %0 : i1 to i32
    %c0_i32_0 = arith.constant 0 : i32
    %2 = arith.cmpi ne, %1, %c0_i32_0 : i32
    scf.if %2 {
      %cst = arith.constant 0.000000e+00 : f32
      %13 = vector.broadcast %cst : f32 to vector<4x512xf32>
      %c0_10 = arith.constant 0 : index
      %c0_11 = arith.constant 0 : index
      %14 = vector.load %arg5[%c0_10, %c0_11] : memref<4x512xf32, #tpu.memory_space<vmem>>, vector<4x512xf32>
      tpu.vector_store %arg5[%c0_10, %c0_11], %13 {strides = array<i32>} : memref<4x512xf32, #tpu.memory_space<vmem>>, vector<4x512xf32>,
    } else {
    }
    %c0 = arith.constant 0 : index
    %c0_1 = arith.constant 0 : index
    %3 = vector.load %arg2[%c0, %c0_1] : memref<4x512xf32, #tpu.memory_space<vmem>>, vector<4x512xf32>
    %c0_2 = arith.constant 0 : index
    %c0_3 = arith.constant 0 : index
    %4 = vector.load %arg3[%c0_2, %c0_3] : memref<4x512xf32, #tpu.memory_space<vmem>>, vector<4x512xf32>
    %5 = arith.subf %3, %4 : vector<4x512xf32>
    %6 = arith.mulf %5, %5 : vector<4x512xf32>
    %c0_4 = arith.constant 0 : index
    %c0_5 = arith.constant 0 : index
    %7 = vector.load %arg5[%c0_4, %c0_5] : memref<4x512xf32, #tpu.memory_space<vmem>>, vector<4x512xf32>
    %8 = arith.addf %7, %6 : vector<4x512xf32>
    %c0_6 = arith.constant 0 : index
    %c0_7 = arith.constant 0 : index
    %9 = vector.load %arg5[%c0_6, %c0_7] : memref<4x512xf32, #tpu.memory_space<vmem>>, vector<4x512xf32>
    tpu.vector_store %arg5[%c0_6, %c0_7], %8 {strides = array<i32>} : memref<4x512xf32, #tpu.memory_space<vmem>>, vector<4x512xf32>,
    %c0_i32_8 = arith.constant 0 : i32
    %10 = arith.cmpi eq, %arg1, %c0_i32_8 : i32
    %11 = arith.extui %10 : i1 to i32
    %c0_i32_9 = arith.constant 0 : i32
    %12 = arith.cmpi ne, %11, %c0_i32_9 : i32
    scf.if %12 {
      %c0_10 = arith.constant 0 : index
      %c0_11 = arith.constant 0 : index
      %13 = vector.load %arg5[%c0_10, %c0_11] : memref<4x512xf32, #tpu.memory_space<vmem>>, vector<4x512xf32>
      %14 = vector.shape_cast %13 : vector<4x512xf32> to vector<1x4x512xf32>
      %cst = arith.constant dense<0.000000e+00> : vector<1xf32>
      %15 = vector.multi_reduction <add>, %14, %cst [1, 2] : vector<1x4x512xf32> to vector<1xf32>
      %16 = vector.shape_cast %15 : vector<1xf32> to vector<1x1x1xf32>
      %17 = vector.extract %16[0, 0, 0] : f32 from vector<1x1x1xf32>
      %18 = vector.broadcast %17 : f32 to vector<1x128xf32>
      %c0_12 = arith.constant 0 : index
      %c0_13 = arith.constant 0 : index
      %19 = vector.load %arg4[%c0_12, %c0_13] : memref<1x128xf32, #tpu.memory_space<vmem>>, vector<1x128xf32>
      tpu.vector_store %arg4[%c0_12, %c0_13], %18 {strides = array<i32>} : memref<1x128xf32, #tpu.memory_space<vmem>>, vector<1x128xf32>,
    } else {
    }
    return
  }
  func.func @transform_0(%arg0: i32, %arg1: i32) -> (i32, i32) {
    %c1_i32 = arith.constant 1 : i32
    %0 = arith.muli %arg0, %c1_i32 : i32
    %1 = arith.addi %0, %arg1 : i32
    %c0_i32 = arith.constant 0 : i32
    %c0_i32_0 = arith.constant 0 : i32
    return %1, %c0_i32 : i32, i32
  }
  func.func @transform_1(%arg0: i32, %arg1: i32) -> (i32, i32) {
    %c1_i32 = arith.constant 1 : i32
    %0 = arith.muli %arg0, %c1_i32 : i32
    %1 = arith.addi %0, %arg1 : i32
    %c0_i32 = arith.constant 0 : i32
    %c0_i32_0 = arith.constant 0 : i32
    return %1, %c0_i32 : i32, i32
  }
  func.func @transform_2(%arg0: i32, %arg1: i32) -> (i32, i32) {
    %c0_i32 = arith.constant 0 : i32
    %c0_i32_0 = arith.constant 0 : i32
    return %c0_i32, %arg0 : i32, i32
  }
}

</mosaic_0001>

<bundles_post_ra>
// kernel: tpu_custom_call.1
= control target key start
LH: loop header
LB: loop body
LE: loop exit
PB: predicated region body
PF: predicated region fallthrough
CT: control target
= control target key end

     0   :  { %7 = vsyncpa [#allocation4], 0  ;;  %s235_s0 = inlined_call_operand.hbm [shape: f32[4,512], index: 0, kind: input, shape index: {}]   ;;  %s236_s1 = inlined_call_operand.hbm [shape: f32[4,512], index: 1, kind: input, shape index: {}]   ;;  %s237_s2 = inlined_call_operand.hbm [shape: f32[1,128], index: 2, kind: output, shape index: {}]  }
   0x1   :  { %8 = vsyncpa [#allocation7], 0 }
   0x2   :  { %9 = vsyncpa [#allocation5], 0  ;;  %s19_s11 = sshll.u32 %s235_s0, 4  ;;  %s208_s12 = smov [#allocation3]   ;;  %s20_s11 = int_to_ptr.hbm [resolvable:$true] %s19_s11 }
   0x3   :  { %s21_s13 = sshll.u32 %s208_s12, 4  ;;  %s34_s16 = sshll.u32 %s236_s1, 4  ;;  %s22_s13 = int_to_ptr.vmem [resolvable:$true] %s21_s13  ;;  %s35_s16 = int_to_ptr.hbm [resolvable:$true] %s34_s16 }
   0x4   :  { %24 = dma.hbm_to_vmem [thread:$0]  %s20_s11, 256, %s22_s13, [#allocation4]  }
   0x5   :  { %s209_s17 = smov [#allocation6]  }
   0x6   :  { %s36_s18 = sshll.u32 %s209_s17, 4  ;;  %s37_s18 = int_to_ptr.vmem [resolvable:$true] %s36_s18 }
   0x7   :  { %39 = dma.hbm_to_vmem [thread:$0]  %s35_s16, 256, %s37_s18, [#allocation7]  }
   0x8   :  { %202 = dma.done.wait [#allocation4], 256  }
   0x9   :  { %203 = vsyncadd [#allocation4], 4294967040 }
   0xa   :  { %204 = dma.done.wait [#allocation7], 256  }
   0xb   :  { %205 = vsyncadd [#allocation7], 4294967040  ;;  %v56_v0 = vld [vmem:[#allocation3] sm:$0xff]  ;;  %v58_v1 = vld [vmem:[#allocation6] sm:$0xff]  ;;  %vm88_vm0 = vcmask 1043456   ;;  %s210_s0 = smov [#allocation8]  }
   0xc   :  { %v57_v2 = vld [vmem:[#allocation3 + $0x8] sm:$0xff]  ;;  %v60_v3 = vsub.f32 %v56_v0, %v58_v1  ;;  %v59_v4 = vld [vmem:[#allocation6 + $0x8] sm:$0xff]  ;;  %s112_s1 = sshll.u32 %s210_s0, 4  ;;  %s114_s21 = sshll.u32 %s237_s2, 4  ;;  %s113_s1 = int_to_ptr.vmem [resolvable:$true] %s112_s1  ;;  %s115_s21 = int_to_ptr.hbm [resolvable:$true] %s114_s21 }
   0xd   :  { %v61_v5 = vsub.f32 %v57_v2, %v59_v4 }
   0xe   :  { %v62_v6 = vmul.f32 %v60_v3, %v60_v3 }
   0xf   :  { %v63_v7 = vmul.f32 %v61_v5, %v61_v5 }
  0x10   :  { %77 = vst [vmem:[#allocation1] ss:$2 sm:$0xff] %v62_v6 }
  0x11   :  { %79 = vst [vmem:[#allocation1 + $0x10] ss:$2 sm:$0xff] %v63_v7 }
  0x17   :  { %v80_v8 = vld.sshfl [vmem:[#allocation1] sm:$0xff pattern:$0x75316420]  ;;  %v81_v9 = vld.sshfl [vmem:[#allocation1 + $0x8] sm:$0xff pattern:$0x75316420] }
  0x18   :  { %v82_v10 = vld.sshfl [vmem:[#allocation1 + $0x10] sm:$0xff pattern:$0x75316420]  ;;  %v83_v11 = vld.sshfl [vmem:[#allocation1 + $0x18] sm:$0xff pattern:$0x75316420] }
  0x19   :  { %v89_v12 = vsel %vm88_vm0, %v80_v8, 0.0  ;;  %v90_v13 = vsel %vm88_vm0, %v81_v9, 0.0  ;;  %v92_v14 = vsel %vm88_vm0, %v82_v10, 0.0  ;;  %v94_v16 = vsel %vm88_vm0, %v83_v11, 0.0 }
  0x1a   :  { %v91_v15 = vadd.f32 %v90_v13, %v89_v12 }
  0x1c   :  { %v93_v17 = vadd.f32 %v92_v14, %v91_v15 }
  0x1e   :  { %v95_v18 = vadd.f32 %v94_v16, %v93_v17 }
  0x20   :  { %96 = vadd.xlane.f32.xlu0 %v95_v18 }
  0x93   :  { %v97_v19 = vpop.xlane.xlu0 %96 }
  0x94   :  { %v98_v20 = vrot.slane %v97_v19, 4 }
  0x96   :  { %v99_v21 = vadd.f32 %v98_v20, %v97_v19 }
  0x98   :  { %v100_v22 = vrot.slane %v99_v21, 2 }
  0x9a   :  { %v101_v23 = vadd.f32 %v100_v22, %v99_v21 }
  0x9c   :  { %v102_v24 = vrot.slane %v101_v23, 1 }
  0x9e   :  { %v103_v25 = vadd.f32 %v102_v24, %v101_v23 }
  0xa0   :  { %125 = vpush %v103_v25 }
  0xd1   :  { %s126_s22 = spop %125 }
  0xd2   :  { %v105_v26 = vstv %s126_s22 }
  0xd3   :  { %106 = vst [vmem:[#allocation8] sm:$0x1] %v105_v26 }
  0xd4   :  { %117 = dma.vmem_to_hbm [thread:$0]  %s113_s1, 16, %s115_s21, [#allocation5]  }
  0xd5   :  { %206 = dma.done.wait [#allocation5], 16  }
  0xd6   :  { %207 = vsyncadd [#allocation5], 4294967280 }
  0xd7   :  { %122 = vsyncpa [#allocation4], 1 }
  0xd8   :  { %123 = vsyncpa [#allocation7], 1 }
  0xd9   :  { %124 = vsyncpa [#allocation5], 1 }

</bundles_post_ra>
